<compile_context>
chip_gen: v6e
topology: v6e:2x2x1
jax: 0.10.0
libtpu: 0.0.40
codegen_flags: <defaults>
</compile_context>

<pallas_src>
import functools

import jax
import jax.numpy as jnp
from jax.experimental import pallas as pl
from jax.experimental.pallas import tpu as pltpu


def moe_ffn_kernel(cnt_ref, tbl_ref, x_ref, w1_ref, b1_ref, w2_ref, b2_ref,
                   wt_ref, o_ref, acc_ref, wt_scr):
    i = pl.program_id(0)            # token tile
    s = pl.program_id(1)            # active-expert slot
    k = pl.program_id(2)            # hidden tile
    n_s = pl.num_programs(1)        # == E (slot axis padded to E)
    n_k = pl.num_programs(2)

    @pl.when(jnp.logical_and(s == 0, k == 0))
    def _init():
        acc_ref[...] = jnp.zeros_like(acc_ref)

    # Padded slots (s >= count[i]) are exact no-ops: every token in this tile
    # has routing weight 0 for the repeated expert, and their weight DMAs are
    # suppressed by the frozen index_maps.
    @pl.when(s < cnt_ref[i])
    def _compute():
        e = tbl_ref[i * n_s + s]                         # expert for this slot

        # Hoisted out of the k loop: select routing-weight column e once per
        # (tile, expert) and stash it in VMEM scratch.
        @pl.when(k == 0)
        def _select_wt():
            wt_all = wt_ref[...]                         # (tm, E)  f32
            lane = jax.lax.broadcasted_iota(jnp.int32, wt_all.shape, 1)
            wt_scr[...] = jnp.sum(jnp.where(lane == e, wt_all, 0.0),
                                  axis=1, keepdims=True)  # (tm, 1)  f32

        wt = wt_scr[...]                                  # (tm, 1)  f32
        x = x_ref[...]                                    # (tm, D)  bf16
        h = jnp.dot(x, w1_ref[...],
                    preferred_element_type=jnp.float32) + b1_ref[...]
        h = jnp.maximum(h, 0.0).astype(x.dtype)           # ReLU, back to bf16
        y = jnp.dot(h, w2_ref[...],
                    preferred_element_type=jnp.float32)   # (tm, D)  f32

        @pl.when(k == 0)
        def _bias():
            acc_ref[...] += wt * b2_ref[...]              # b2 once per expert

        acc_ref[...] += wt * y

    @pl.when(jnp.logical_and(s == n_s - 1, k == n_k - 1))
    def _finalize():
        o_ref[...] = acc_ref[...].astype(o_ref.dtype)


def _pick_tile(n, preferred, align):
    """Largest t <= preferred with t % align == 0 and n % t == 0; else n."""
    t = min(preferred, n)
    t -= t % align
    while t >= align:
        if n % t == 0:
            return t
        t -= align
    return n


def _vmem_capacity_bytes():
    try:
        info = pltpu.get_tpu_info()
        cap = getattr(info, "vmem_capacity_bytes", None)
        if cap:
            return int(cap)
    except Exception:
        pass
    return 64 << 20   # conservative (v7x per-TensorCore)


@functools.partial(jax.jit, static_argnames=("n_expert_per_token", "tm", "th"))
def moe_ffn_forward(xs, gate_w, w1, b1, w2, b2, n_expert_per_token, *,
                    tm=None, th=None):
    """xs: (B, L, D).  gate_w: (E, D) (torch Linear weight layout).
    w1: (E, D, H), b1: (E, H), w2: (E, H, D), b2: (E, D)."""
    B, L, D = xs.shape
    E, _, H = w1.shape
    N = B * L
    x = xs.reshape(N, D)

    # ---- gating (glue, plain JAX) ----
    router = x @ gate_w.T                                        # (N, E)
    logits, indices = jax.lax.top_k(router, n_expert_per_token)  # (N, k)
    weights = jax.nn.softmax(logits.astype(jnp.float32), axis=-1)
    onehot = jax.nn.one_hot(indices, E, dtype=jnp.float32)       # (N, k, E)
    w_dense = jnp.sum(weights[..., None] * onehot, axis=1)       # (N, E) f32

    # ---- per-generation tiling + VMEM budget ----
    cdt = jnp.bfloat16
    cb = jnp.dtype(cdt).itemsize
    ob = jnp.dtype(xs.dtype).itemsize
    vmem_cap = _vmem_capacity_bytes()
    budget = int(vmem_cap * 0.6)          # pipeline buffers + scratch budget

    def _vmem_needed(tm_, th_):
        per_step = (tm_ * D * cb          # x tile
                    + D * th_ * cb        # w1 tile
                    + th_ * 4             # b1 tile
                    + th_ * D * cb        # w2 tile
                    + D * 4               # b2 tile
                    + tm_ * E * 4         # routing weights
                    + tm_ * D * ob)       # output tile
        return 2 * per_step + tm_ * D * 4 + tm_ * 4   # + f32 acc + wt scratch

    if tm is None:
        tm_pref = 1024 if vmem_cap >= (96 << 20) else 512
        tm_pref = min(tm_pref, max(16, N // 2))        # keep >= 2 token tiles
        tm = _pick_tile(N, tm_pref, 16)
    if th is None:
        th_align = 256 if H % 256 == 0 else 128
        th = _pick_tile(H, 512, th_align)
    # shrink until the double-buffered footprint fits the budget
    while _vmem_needed(tm, th) > budget:
        if th > 128 and H % (th // 2) == 0 and (th // 2) % 128 == 0:
            th //= 2
        elif tm > 64 and N % (tm // 2) == 0 and (tm // 2) % 16 == 0:
            tm //= 2
        else:
            break
    assert N % tm == 0 and H % th == 0
    n_tiles = N // tm
    n_k = H // th
    grid = (n_tiles, E, n_k)

    vmem_needed = _vmem_needed(tm, th)
    vmem_limit = int(min(vmem_cap * 3 // 4,
                         max(2 * vmem_needed + (4 << 20), 32 << 20)))

    # ---- per-tile active-expert tables (scalar prefetch -> 1D SMEM) ----
    flags = jnp.max(w_dense.reshape(n_tiles, tm, E), axis=1) > 0.0   # (T, E)
    count = jnp.sum(flags, axis=1).astype(jnp.int32)                 # (T,)
    e_idx = jnp.arange(E, dtype=jnp.int32)
    sort_key = jnp.where(flags, e_idx[None, :], e_idx[None, :] + E)
    order = jnp.argsort(sort_key, axis=1).astype(jnp.int32)          # active first
    last_pos = jnp.maximum(count - 1, 0)[:, None]
    slot = jnp.arange(E, dtype=jnp.int32)[None, :]
    tbl = jnp.take_along_axis(order, jnp.minimum(slot, last_pos), axis=1)
    tbl = tbl.reshape(-1).astype(jnp.int32)                          # (T*E,)

    # ---- dtypes: bf16 on the MXU, f32 biases / accumulator ----
    x_c = x.astype(cdt)
    w1_c = w1.astype(cdt)
    w2_c = w2.astype(cdt)
    b1_f = b1.astype(jnp.float32)[:, None, :]                        # (E, 1, H)
    b2_f = b2.astype(jnp.float32)[:, None, :]                        # (E, 1, D)

    # ---- index maps (scalar prefetch refs trail the grid indices) ----
    def _live_k(i, s, k, cnt):
        # freeze k for padded/inactive slots so the weight DMA is suppressed
        live = (s < cnt[i]).astype(jnp.int32)
        return k * live + (n_k - 1) * (1 - live)

    x_spec = pl.BlockSpec((tm, D), lambda i, s, k, cnt, tbl: (i, 0))
    w1_spec = pl.BlockSpec(
        (pl.Squeezed(), D, th),
        lambda i, s, k, cnt, tbl: (tbl[i * E + s], 0, _live_k(i, s, k, cnt)))
    b1_spec = pl.BlockSpec(
        (pl.Squeezed(), 1, th),
        lambda i, s, k, cnt, tbl: (tbl[i * E + s], 0, _live_k(i, s, k, cnt)))
    w2_spec = pl.BlockSpec(
        (pl.Squeezed(), th, D),
        lambda i, s, k, cnt, tbl: (tbl[i * E + s], _live_k(i, s, k, cnt), 0))
    b2_spec = pl.BlockSpec(
        (pl.Squeezed(), 1, D),
        lambda i, s, k, cnt, tbl: (tbl[i * E + s], 0, 0))
    wt_spec = pl.BlockSpec((tm, E), lambda i, s, k, cnt, tbl: (i, 0))
    out_spec = pl.BlockSpec((tm, D), lambda i, s, k, cnt, tbl: (i, 0))

    # ---- advisory cost estimate (weights re-streamed per token tile) ----
    flops = 4 * N * D * H * E
    bytes_accessed = (N * D * cb + N * D * ob + N * E * 4
                      + n_tiles * E * (2 * D * H * cb + (H + D) * 4))

    out = pl.pallas_call(
        moe_ffn_kernel,
        out_shape=jax.ShapeDtypeStruct((N, D), xs.dtype),
        grid_spec=pltpu.PrefetchScalarGridSpec(
            num_scalar_prefetch=2,
            grid=grid,
            in_specs=[x_spec, w1_spec, b1_spec, w2_spec, b2_spec, wt_spec],
            out_specs=out_spec,
            scratch_shapes=[pltpu.VMEM((tm, D), jnp.float32),
                            pltpu.VMEM((tm, 1), jnp.float32)],
        ),
        compiler_params=pltpu.CompilerParams(
            dimension_semantics=("parallel", "arbitrary", "arbitrary"),
            vmem_limit_bytes=vmem_limit,
        ),
        cost_estimate=pl.CostEstimate(flops=flops, transcendentals=0,
                                      bytes_accessed=bytes_accessed),
    )(count, tbl, x_c, w1_c, b1_f, w2_c, b2_f, w_dense.astype(jnp.float32))

    return out.reshape(B, L, D)


def moe_ffn_reference(xs, gate_w, w1, b1, w2, b2, n_expert_per_token):
    """Pure-JAX f32 reference mirroring the PyTorch forward (eval mode)."""
    B, L, D = xs.shape
    E = gate_w.shape[0]
    x = xs.reshape(-1, D)
    router = x @ gate_w.T
    logits, indices = jax.lax.top_k(router, n_expert_per_token)
    weights = jax.nn.softmax(logits.astype(jnp.float32), axis=-1).astype(x.dtype)
    out = jnp.zeros_like(x)
    for i in range(E):
        h = jnp.maximum(x @ w1[i] + b1[i], 0.0)
        y = h @ w2[i] + b2[i]
        w_i = jnp.sum(jnp.where(indices == i, weights, 0.0), axis=-1,
                      keepdims=True)
        out = out + w_i * y
    return out.reshape(B, L, D)


def _run_case(key, B, L, D, H, n_expert, n_expert_per_token, tm, th):
    k_x, k_g, k_w1, k_b1, k_w2, k_b2 = jax.random.split(key, 6)
    xs = jax.random.normal(k_x, (B, L, D), dtype=jnp.float32)
    gate_w = jax.random.normal(k_g, (n_expert, D), dtype=jnp.float32) * 0.1
    w1 = jax.random.normal(k_w1, (n_expert, D, H), dtype=jnp.float32) * 0.1
    b1 = jax.random.normal(k_b1, (n_expert, H), dtype=jnp.float32) * 0.1
    w2 = jax.random.normal(k_w2, (n_expert, H, D), dtype=jnp.float32) * 0.1
    b2 = jax.random.normal(k_b2, (n_expert, D), dtype=jnp.float32) * 0.1

    out = moe_ffn_forward(xs, gate_w, w1, b1, w2, b2, n_expert_per_token,
                          tm=tm, th=th)
    out = jax.block_until_ready(out)
    ref = moe_ffn_reference(xs, gate_w, w1, b1, w2, b2, n_expert_per_token)

    assert out.shape == (B, L, D)
    assert bool(jnp.all(jnp.isfinite(out)))
    # bf16 matmuls (f32 accumulation) vs an f32 reference -> loose tolerance.
    rel_err = jnp.linalg.norm(out - ref) / (jnp.linalg.norm(ref) + 1e-12)
    assert float(rel_err) < 2e-2, f"mismatch vs reference: rel_err={float(rel_err)}"


if __name__ == "__main__":
    key = jax.random.PRNGKey(0)
    k1, k2 = jax.random.split(key)

    # Case 1: dense routing (every expert active in every tile).  Exercises
    # the token-parallel axis (2 tiles) and the H-reduction axis (n_k=2).
    _run_case(k1, B=2, L=64, D=64, H=256, n_expert=4, n_expert_per_token=2,
              tm=64, th=128)

    # Case 2: guaranteed-sparse routing (8 tokens/tile, top-1 of 16 experts),
    # so padded slots exist in every tile: exercises the compute skip and the
    # frozen-index weight-DMA suppression path.
    _run_case(k2, B=2, L=8, D=64, H=256, n_expert=16, n_expert_per_token=1,
              tm=8, th=128)

    print("KERNEL_OK")
</pallas_src>

<mosaic_0001>
module attributes {stable_mosaic.version = 11 : i64} {
  func.func @moe_ffn_kernel(%arg0: i32, %arg1: i32, %arg2: i32, %arg3: memref<2xi32, #tpu.memory_space<smem>>, %arg4: memref<8xi32, #tpu.memory_space<smem>>, %arg5: memref<64x64xbf16, #tpu.memory_space<vmem>>, %arg6: memref<1x64x128xbf16, #tpu.memory_space<vmem>>, %arg7: memref<1x1x128xf32, #tpu.memory_space<vmem>>, %arg8: memref<1x128x64xbf16, #tpu.memory_space<vmem>>, %arg9: memref<1x1x64xf32, #tpu.memory_space<vmem>>, %arg10: memref<64x4xf32, #tpu.memory_space<vmem>>, %arg11: memref<64x64xf32, #tpu.memory_space<vmem>>, %arg12: memref<64x64xf32, #tpu.memory_space<vmem>>, %arg13: memref<64x1xf32, #tpu.memory_space<vmem>>) attributes {dimension_semantics = [#tpu.dimension_semantics<parallel>, #tpu.dimension_semantics<arbitrary>, #tpu.dimension_semantics<arbitrary>], iteration_bounds = array<i64: 2, 4, 2>, scalar_prefetch = 2 : i64, scratch_operands = 2 : i64, tpu.core_type = #tpu.core_type<tc>, window_params = [{transform_indices = @transform_0, window_bounds = array<i64: 64, 64>}, {transform_indices = @transform_1, window_bounds = array<i64: 1, 64, 128>}, {transform_indices = @transform_2, window_bounds = array<i64: 1, 1, 128>}, {transform_indices = @transform_3, window_bounds = array<i64: 1, 128, 64>}, {transform_indices = @transform_4, window_bounds = array<i64: 1, 1, 64>}, {transform_indices = @transform_5, window_bounds = array<i64: 64, 4>}, {transform_indices = @transform_6, window_bounds = array<i64: 64, 64>}]} {
    %c0_i32 = arith.constant 0 : i32
    %0 = arith.cmpi eq, %arg1, %c0_i32 : i32
    %c0_i32_0 = arith.constant 0 : i32
    %1 = arith.cmpi eq, %arg2, %c0_i32_0 : i32
    %2 = arith.andi %0, %1 : i1
    %3 = arith.extui %2 : i1 to i32
    %c0_i32_1 = arith.constant 0 : i32
    %4 = arith.cmpi ne, %3, %c0_i32_1 : i32
    scf.if %4 {
      %cst = arith.constant 0.000000e+00 : f32
      %15 = vector.broadcast %cst : f32 to vector<64x64xf32>
      %c0 = arith.constant 0 : index
      %c0_4 = arith.constant 0 : index
      %16 = vector.load %arg12[%c0, %c0_4] : memref<64x64xf32, #tpu.memory_space<vmem>>, vector<64x64xf32>
      tpu.vector_store %arg12[%c0, %c0_4], %15 {strides = array<i32>} : memref<64x64xf32, #tpu.memory_space<vmem>>, vector<64x64xf32>,
    } else {
    }
    %5 = arith.index_cast %arg0 : i32 to index
    %6 = memref.load %arg3[%5] : memref<2xi32, #tpu.memory_space<smem>>
    %7 = arith.cmpi slt, %arg1, %6 : i32
    %8 = arith.extui %7 : i1 to i32
    %c0_i32_2 = arith.constant 0 : i32
    %9 = arith.cmpi ne, %8, %c0_i32_2 : i32
    scf.if %9 {
      %c4_i32 = arith.constant 4 : i32
      %15 = arith.muli %arg0, %c4_i32 : i32
      %16 = arith.addi %15, %arg1 : i32
      %17 = arith.index_cast %16 : i32 to index
      %18 = memref.load %arg4[%17] : memref<8xi32, #tpu.memory_space<smem>>
      %c0_i32_4 = arith.constant 0 : i32
      %19 = arith.cmpi eq, %arg2, %c0_i32_4 : i32
      %20 = arith.extui %19 : i1 to i32
      %c0_i32_5 = arith.constant 0 : i32
      %21 = arith.cmpi ne, %20, %c0_i32_5 : i32
      scf.if %21 {
        %c0_26 = arith.constant 0 : index
        %c0_27 = arith.constant 0 : index
        %45 = vector.load %arg10[%c0_26, %c0_27] : memref<64x4xf32, #tpu.memory_space<vmem>>, vector<64x4xf32>
        %46 = tpu.iota {dimensions = array<i32: 1>} : vector<64x4xi32>
        %47 = vector.broadcast %18 : i32 to vector<64x4xi32>
        %48 = arith.cmpi eq, %46, %47 : vector<64x4xi32>
        %cst_28 = arith.constant 0.000000e+00 : f32
        %49 = vector.broadcast %cst_28 : f32 to vector<64x4xf32>
        %50 = arith.select %48, %45, %49 : vector<64x4xi1>, vector<64x4xf32>
        %cst_29 = arith.constant dense<0.000000e+00> : vector<64xf32>
        %51 = vector.multi_reduction <add>, %50, %cst_29 [1] : vector<64x4xf32> to vector<64xf32>
        %52 = vector.shape_cast %51 : vector<64xf32> to vector<64x1xf32>
        %c0_30 = arith.constant 0 : index
        %c0_31 = arith.constant 0 : index
        %53 = vector.load %arg13[%c0_30, %c0_31] : memref<64x1xf32, #tpu.memory_space<vmem>>, vector<64x1xf32>
        tpu.vector_store %arg13[%c0_30, %c0_31], %52 {strides = array<i32>} : memref<64x1xf32, #tpu.memory_space<vmem>>, vector<64x1xf32>,
      } else {
      }
      %c0 = arith.constant 0 : index
      %c0_6 = arith.constant 0 : index
      %22 = vector.load %arg13[%c0, %c0_6] : memref<64x1xf32, #tpu.memory_space<vmem>>, vector<64x1xf32>
      %c0_7 = arith.constant 0 : index
      %c0_8 = arith.constant 0 : index
      %23 = vector.load %arg5[%c0_7, %c0_8] : memref<64x64xbf16, #tpu.memory_space<vmem>>, vector<64x64xbf16>
      %c0_9 = arith.constant 0 : index
      %c0_10 = arith.constant 0 : index
      %c0_11 = arith.constant 0 : index
      %24 = vector.load %arg6[%c0_9, %c0_10, %c0_11] : memref<1x64x128xbf16, #tpu.memory_space<vmem>>, vector<1x64x128xbf16>
      %25 = vector.shape_cast %24 : vector<1x64x128xbf16> to vector<64x128xbf16>
      %cst = arith.constant dense<0.000000e+00> : vector<64x128xf32>
      %26 = tpu.matmul %23, %25, %cst {dimension_numbers = #tpu.dot_dimension_numbers<[1], [0], [0], [1], [0, 0, 1, 1], [], []>} : vector<64x64xbf16>, vector<64x128xbf16>, vector<64x128xf32> -> vector<64x128xf32>
      %c0_12 = arith.constant 0 : index
      %c0_13 = arith.constant 0 : index
      %c0_14 = arith.constant 0 : index
      %27 = vector.load %arg7[%c0_12, %c0_13, %c0_14] : memref<1x1x128xf32, #tpu.memory_space<vmem>>, vector<1x1x128xf32>
      %28 = vector.shape_cast %27 : vector<1x1x128xf32> to vector<1x128xf32>
      %29 = vector.broadcast %28 : vector<1x128xf32> to vector<64x128xf32>
      %30 = arith.addf %26, %29 : vector<64x128xf32>
      %cst_15 = arith.constant 0.000000e+00 : f32
      %31 = vector.broadcast %cst_15 : f32 to vector<64x128xf32>
      %32 = arith.maximumf %30, %31 : vector<64x128xf32>
      %33 = arith.truncf %32 : vector<64x128xf32> to vector<64x128xbf16>
      %c0_16 = arith.constant 0 : index
      %c0_17 = arith.constant 0 : index
      %c0_18 = arith.constant 0 : index
      %34 = vector.load %arg8[%c0_16, %c0_17, %c0_18] : memref<1x128x64xbf16, #tpu.memory_space<vmem>>, vector<1x128x64xbf16>
      %35 = vector.shape_cast %34 : vector<1x128x64xbf16> to vector<128x64xbf16>
      %cst_19 = arith.constant dense<0.000000e+00> : vector<64x64xf32>
      %36 = tpu.matmul %33, %35, %cst_19 {dimension_numbers = #tpu.dot_dimension_numbers<[1], [0], [0], [1], [0, 0, 1, 1], [], []>} : vector<64x128xbf16>, vector<128x64xbf16>, vector<64x64xf32> -> vector<64x64xf32>
      %c0_i32_20 = arith.constant 0 : i32
      %37 = arith.cmpi eq, %arg2, %c0_i32_20 : i32
      %38 = arith.extui %37 : i1 to i32
      %c0_i32_21 = arith.constant 0 : i32
      %39 = arith.cmpi ne, %38, %c0_i32_21 : i32
      scf.if %39 {
        %c0_26 = arith.constant 0 : index
        %c0_27 = arith.constant 0 : index
        %45 = vector.load %arg12[%c0_26, %c0_27] : memref<64x64xf32, #tpu.memory_space<vmem>>, vector<64x64xf32>
        %c0_28 = arith.constant 0 : index
        %c0_29 = arith.constant 0 : index
        %c0_30 = arith.constant 0 : index
        %46 = vector.load %arg9[%c0_28, %c0_29, %c0_30] : memref<1x1x64xf32, #tpu.memory_space<vmem>>, vector<1x1x64xf32>
        %47 = vector.shape_cast %46 : vector<1x1x64xf32> to vector<1x64xf32>
        %48 = vector.broadcast %22 : vector<64x1xf32> to vector<64x64xf32>
        %49 = vector.broadcast %47 : vector<1x64xf32> to vector<64x64xf32>
        %50 = arith.mulf %48, %49 : vector<64x64xf32>
        %51 = arith.addf %45, %50 : vector<64x64xf32>
        %c0_31 = arith.constant 0 : index
        %c0_32 = arith.constant 0 : index
        %52 = vector.load %arg12[%c0_31, %c0_32] : memref<64x64xf32, #tpu.memory_space<vmem>>, vector<64x64xf32>
        tpu.vector_store %arg12[%c0_31, %c0_32], %51 {strides = array<i32>} : memref<64x64xf32, #tpu.memory_space<vmem>>, vector<64x64xf32>,
      } else {
      }
      %c0_22 = arith.constant 0 : index
      %c0_23 = arith.constant 0 : index
      %40 = vector.load %arg12[%c0_22, %c0_23] : memref<64x64xf32, #tpu.memory_space<vmem>>, vector<64x64xf32>
      %41 = vector.broadcast %22 : vector<64x1xf32> to vector<64x64xf32>
      %42 = arith.mulf %41, %36 : vector<64x64xf32>
      %43 = arith.addf %40, %42 : vector<64x64xf32>
      %c0_24 = arith.constant 0 : index
      %c0_25 = arith.constant 0 : index
      %44 = vector.load %arg12[%c0_24, %c0_25] : memref<64x64xf32, #tpu.memory_space<vmem>>, vector<64x64xf32>
      tpu.vector_store %arg12[%c0_24, %c0_25], %43 {strides = array<i32>} : memref<64x64xf32, #tpu.memory_space<vmem>>, vector<64x64xf32>,
    } else {
    }
    %c3_i32 = arith.constant 3 : i32
    %10 = arith.cmpi eq, %arg1, %c3_i32 : i32
    %c1_i32 = arith.constant 1 : i32
    %11 = arith.cmpi eq, %arg2, %c1_i32 : i32
    %12 = arith.andi %10, %11 : i1
    %13 = arith.extui %12 : i1 to i32
    %c0_i32_3 = arith.constant 0 : i32
    %14 = arith.cmpi ne, %13, %c0_i32_3 : i32
    scf.if %14 {
      %c0 = arith.constant 0 : index
      %c0_4 = arith.constant 0 : index
      %15 = vector.load %arg12[%c0, %c0_4] : memref<64x64xf32, #tpu.memory_space<vmem>>, vector<64x64xf32>
      %c0_5 = arith.constant 0 : index
      %c0_6 = arith.constant 0 : index
      %16 = vector.load %arg11[%c0_5, %c0_6] : memref<64x64xf32, #tpu.memory_space<vmem>>, vector<64x64xf32>
      tpu.vector_store %arg11[%c0_5, %c0_6], %15 {strides = array<i32>} : memref<64x64xf32, #tpu.memory_space<vmem>>, vector<64x64xf32>,
    } else {
    }
    return
  }
  func.func @transform_0(%arg0: i32, %arg1: i32, %arg2: i32, %arg3: memref<2xi32, #tpu.memory_space<smem>>, %arg4: memref<8xi32, #tpu.memory_space<smem>>) -> (i32, i32) {
    %c0_i32 = arith.constant 0 : i32
    %c0_i32_0 = arith.constant 0 : i32
    return %arg0, %c0_i32 : i32, i32
  }
  func.func @transform_1(%arg0: i32, %arg1: i32, %arg2: i32, %arg3: memref<2xi32, #tpu.memory_space<smem>>, %arg4: memref<8xi32, #tpu.memory_space<smem>>) -> (i32, i32, i32) {
    %c4_i32 = arith.constant 4 : i32
    %0 = arith.muli %arg0, %c4_i32 : i32
    %1 = arith.addi %0, %arg1 : i32
    %2 = arith.index_cast %1 : i32 to index
    %3 = memref.load %arg4[%2] : memref<8xi32, #tpu.memory_space<smem>>
    %4 = arith.index_cast %arg0 : i32 to index
    %5 = memref.load %arg3[%4] : memref<2xi32, #tpu.memory_space<smem>>
    %6 = arith.cmpi slt, %arg1, %5 : i32
    %7 = arith.extui %6 : i1 to i32
    %8 = arith.muli %arg2, %7 : i32
    %c1_i32 = arith.constant 1 : i32
    %9 = arith.subi %c1_i32, %7 : i32
    %c1_i32_0 = arith.constant 1 : i32
    %10 = arith.muli %c1_i32_0, %9 : i32
    %11 = arith.addi %8, %10 : i32
    %c0_i32 = arith.constant 0 : i32
    %c0_i32_1 = arith.constant 0 : i32
    return %3, %c0_i32, %11 : i32, i32, i32
  }
  func.func @transform_2(%arg0: i32, %arg1: i32, %arg2: i32, %arg3: memref<2xi32, #tpu.memory_space<smem>>, %arg4: memref<8xi32, #tpu.memory_space<smem>>) -> (i32, i32, i32) {
    %c4_i32 = arith.constant 4 : i32
    %0 = arith.muli %arg0, %c4_i32 : i32
    %1 = arith.addi %0, %arg1 : i32
    %2 = arith.index_cast %1 : i32 to index
    %3 = memref.load %arg4[%2] : memref<8xi32, #tpu.memory_space<smem>>
    %4 = arith.index_cast %arg0 : i32 to index
    %5 = memref.load %arg3[%4] : memref<2xi32, #tpu.memory_space<smem>>
    %6 = arith.cmpi slt, %arg1, %5 : i32
    %7 = arith.extui %6 : i1 to i32
    %8 = arith.muli %arg2, %7 : i32
    %c1_i32 = arith.constant 1 : i32
    %9 = arith.subi %c1_i32, %7 : i32
    %c1_i32_0 = arith.constant 1 : i32
    %10 = arith.muli %c1_i32_0, %9 : i32
    %11 = arith.addi %8, %10 : i32
    %c0_i32 = arith.constant 0 : i32
    %c0_i32_1 = arith.constant 0 : i32
    return %3, %c0_i32, %11 : i32, i32, i32
  }
  func.func @transform_3(%arg0: i32, %arg1: i32, %arg2: i32, %arg3: memref<2xi32, #tpu.memory_space<smem>>, %arg4: memref<8xi32, #tpu.memory_space<smem>>) -> (i32, i32, i32) {
    %c4_i32 = arith.constant 4 : i32
    %0 = arith.muli %arg0, %c4_i32 : i32
    %1 = arith.addi %0, %arg1 : i32
    %2 = arith.index_cast %1 : i32 to index
    %3 = memref.load %arg4[%2] : memref<8xi32, #tpu.memory_space<smem>>
    %4 = arith.index_cast %arg0 : i32 to index
    %5 = memref.load %arg3[%4] : memref<2xi32, #tpu.memory_space<smem>>
    %6 = arith.cmpi slt, %arg1, %5 : i32
    %7 = arith.extui %6 : i1 to i32
    %8 = arith.muli %arg2, %7 : i32
    %c1_i32 = arith.constant 1 : i32
    %9 = arith.subi %c1_i32, %7 : i32
    %c1_i32_0 = arith.constant 1 : i32
    %10 = arith.muli %c1_i32_0, %9 : i32
    %11 = arith.addi %8, %10 : i32
    %c0_i32 = arith.constant 0 : i32
    %c0_i32_1 = arith.constant 0 : i32
    return %3, %11, %c0_i32 : i32, i32, i32
  }
  func.func @transform_4(%arg0: i32, %arg1: i32, %arg2: i32, %arg3: memref<2xi32, #tpu.memory_space<smem>>, %arg4: memref<8xi32, #tpu.memory_space<smem>>) -> (i32, i32, i32) {
    %c4_i32 = arith.constant 4 : i32
    %0 = arith.muli %arg0, %c4_i32 : i32
    %1 = arith.addi %0, %arg1 : i32
    %2 = arith.index_cast %1 : i32 to index
    %3 = memref.load %arg4[%2] : memref<8xi32, #tpu.memory_space<smem>>
    %c0_i32 = arith.constant 0 : i32
    %c0_i32_0 = arith.constant 0 : i32
    %c0_i32_1 = arith.constant 0 : i32
    return %3, %c0_i32, %c0_i32_0 : i32, i32, i32
  }
  func.func @transform_5(%arg0: i32, %arg1: i32, %arg2: i32, %arg3: memref<2xi32, #tpu.memory_space<smem>>, %arg4: memref<8xi32, #tpu.memory_space<smem>>) -> (i32, i32) {
    %c0_i32 = arith.constant 0 : i32
    %c0_i32_0 = arith.constant 0 : i32
    return %arg0, %c0_i32 : i32, i32
  }
  func.func @transform_6(%arg0: i32, %arg1: i32, %arg2: i32, %arg3: memref<2xi32, #tpu.memory_space<smem>>, %arg4: memref<8xi32, #tpu.memory_space<smem>>) -> (i32, i32) {
    %c0_i32 = arith.constant 0 : i32
    %c0_i32_0 = arith.constant 0 : i32
    return %arg0, %c0_i32 : i32, i32
  }
}

</mosaic_0001>

<bundles_post_ra>
// kernel: moe_ffn_forward.1
= control target key start
LH: loop header
LB: loop body
LE: loop exit
PB: predicated region body
PF: predicated region fallthrough
CT: control target
= control target key end

     0   :  { %s2278_s0 = inlined_call_operand.vmem [shape: s32[2], index: 0, kind: input, shape index: {}]   ;;  %s2279_s2 = inlined_call_operand.vmem [shape: bf16[128,64], index: 2, kind: input, shape index: {}]   ;;  %s2280_s3 = inlined_call_operand.vmem [shape: bf16[4,64,256], index: 3, kind: input, shape index: {}]   ;;  %s2281_s4 = inlined_call_operand.vmem [shape: f32[4,1,256], index: 4, kind: input, shape index: {}]   ;;  %s2282_s5 = inlined_call_operand.vmem [shape: bf16[4,256,64], index: 5, kind: input, shape index: {}]   ;;  %s2283_s6 = inlined_call_operand.vmem [shape: f32[4,1,64], index: 6, kind: input, shape index: {}]   ;;  %s2284_s7 = inlined_call_operand.vmem [shape: f32[128,4], index: 7, kind: input, shape index: {}]   ;;  %s2285_s8 = inlined_call_operand.hbm [shape: f32[128,64], index: 8, kind: output, shape index: {}]   ;;  %s2286_s1 = inlined_call_operand.vmem [shape: s32[8], index: 1, kind: input, shape index: {}]  }
   0x1   :  { %2301 = sst [smem:[#allocation25_spill]] %s2279_s2  ;;  %s13_s29 = sshll.u32 %s2278_s0, 4  ;;  %s14_s29 = int_to_ptr.vmem [resolvable:$true] %s13_s29 }
   0x2   :  { %2302 = sst [smem:[#allocation26_spill]] %s2280_s3  ;;  %s17_s10 = sshll.u32 %s2286_s1, 4  ;;  %s18_s10 = int_to_ptr.vmem [resolvable:$true] %s17_s10 }
   0x3   :  { %2303 = sst [smem:[#allocation27_spill]] %s2281_s4  ;;  %s1634_s11 = scalar_lea.vmem %s14_s29, 16 }
   0x4   :  { %2304 = sst [smem:[#allocation28_spill]] %s2282_s5  ;;  %p1635_p0 = scmp.ne.s32.totalorder %s14_s29, %s1634_s11 }
   0x5   :  { %2305 = sst [smem:[#allocation29_spill]] %s2283_s6  ;;  %p1639_p1 = scmp.lt.s32.totalorder %s14_s29, %s14_s29 }
   0x6   :  { %2306 = sst [smem:[#allocation30_spill]] %s2284_s7  ;;  %p1640_p2 = scmp.lt.s32.totalorder %s1634_s11, %s1634_s11 }
   0x7   :  { %2307 = sst [smem:[#allocation31_spill]] %s2285_s8 }
   0x8   :  { %p1641_p3 = por %p1640_p2, %p1639_p1 }
   0xa   :  { %p1642_p4 = pnand %p1641_p3, %p1635_p0 }
   0xc   :  { %1645 = shalt.err (!%p1642_p4)  }
   0xd   :  { %s1786_s12 = smov [#allocation5]   ;;  %s1646_s13 = scalar_lea.vmem %s18_s10, 16 }
   0xe   :  { %16 = dma.vmem_to_smem %s14_s29, 16, %s1786_s12, [#allocation4] }
   0xf   :  { %p1647_p5 = scmp.ne.s32.totalorder %s18_s10, %s1646_s13  ;;  %p1651_p6 = scmp.lt.s32.totalorder %s18_s10, %s18_s10 }
  0x10   :  { %p1652_p7 = scmp.lt.s32.totalorder %s1646_s13, %s1646_s13 }
  0x12   :  { %p1653_p8 = por %p1652_p7, %p1651_p6 }
  0x14   :  { %p1654_p9 = pnand %p1653_p8, %p1647_p5 }
  0x16   :  { %1657 = shalt.err (!%p1654_p9)  }
  0x17   :  { %s1787_s0 = smov [#allocation6]  }
  0x18   :  { %20 = dma.vmem_to_smem %s18_s10, 16, %s1787_s0, [#allocation4] }
  0x19   :  { %1732 = dma.done.wait [#allocation4], 32 }
  0x1a   :  { %1733 = vsyncadd [#allocation4], 4294967264 }
  0x1b   :  { %22 = sfence }
  0x1c   :  { %23 = vsyncpa [#allocation9], 0 }
  0x1d   :  { %25 = vsyncpa [#allocation9 + $0x1], 0  ;;  %s1845_s1 = smov 0   ;;  %s1847_s14 = smov 0  }
  0x1e   :  { %s1849_s15 = smov 0   ;;  %s1851_s16 = smov 0  }
  0x1f   :  { %s1853_s17 = smov 0   ;;  %s1855_s18 = smov 0  }
  0x20   :  { %s1857_s19 = smov 0   ;;  %s1859_s20 = smov 0  }
  0x21   :  { %s1861_s21 = smov 0   ;;  %s1863_s22 = smov 0  }
  0x22   :  { %s1865_s23 = smov 0   ;;  %s1867_s24 = smov 0  }
  0x23 LB: > { %2308 = sst [smem:[#allocation12_spill]] %s1740_s1  ;;  %s43_s26 = sadd.s32 1, %s1772_s21  ;;  %s1784_s24 = sphi %s1867_s24, %s31_s24   ;;  %s1780_s23 = sphi %s1865_s23, %s2356_s23   ;;  %s1776_s22 = sphi %s1863_s22, %s2355_s22   ;;  %s1772_s21 = sphi %s1861_s21, %s2354_s21   ;;  %s1768_s20 = sphi %s1859_s20, %s2353_s20   ;;  %s1764_s19 = sphi %s1857_s19, %s2352_s19   ;;  %s1760_s18 = sphi %s1855_s18, %s2351_s18   ;;  %s1756_s17 = sphi %s1853_s17, %s2350_s17   ;;  %s1752_s16 = sphi %s1851_s16, %s2349_s16   ;;  %s1748_s15 = sphi %s1849_s15, %s2348_s15   ;;  %s1744_s14 = sphi %s1847_s14, %s2358_s14   ;;  %s1740_s1 = sphi %s1845_s1, %s2357_s1  }
  0x24   : > { %2309 = sst [smem:[#allocation13_spill]] %s1748_s15  ;;  %p44_p10 = scmp.ge.s32.totalorder %s43_s26, 2 }
  0x25   : > { %2310 = sst [smem:[#allocation14_spill]] %s1756_s17  ;;  %s46_s27 = sadd.s32 1, %s1776_s22 }
  0x26   : > { %2311 = sst [smem:[#allocation15_spill]] %s1760_s18  ;;  %s50_s30 = sadd.s32 1, %s1780_s23 }
  0x27   : > { %2312 = sst [smem:[#allocation16_spill]] %s1764_s19  ;;  %s1384_s9 = sshll.u32 %s1780_s23, 2 }
  0x28   : > { %2313 = sst [smem:[#allocation17_spill]] %s1772_s21  ;;  %s2360_s27 = smov (!%p44_p10, %s46_s27), %s1776_s22 }
  0x29   : > { %2314 = sst [smem:[#allocation18_spill]] %s1776_s22  ;;  %s2362_s26 = smov (%p44_p10, %s43_s26), 0 }
  0x2a   : > { %2315 = sst [smem:[#allocation19_spill]] %s1780_s23  ;;  %p48_p11 = scmp.ge.s32.totalorder %s2360_s27, 4 }
  0x2b   : > { %s83_s29 = sld [smem:[#allocation5 + %s1780_s23]]  ;;  %s1916_s10 = sadd.s32 %s1776_s22, %s1384_s9 }
  0x2c   : > { %2316 = sst [smem:[#allocation20_spill]] %s2362_s26  ;;  %p110_p12 = scmp.ne.s32.totalorder %s1756_s17, %s1752_s16 }
  0x2d   : > { %p111_p13 = scmp.eq.s32.totalorder %s1784_s24, 0  ;;  %s2364_s27 = smov (%p48_p11, %s2360_s27), 0 }
  0x2e   : > { %2317 = sst [smem:[#allocation21_spill]] %s2364_s27  ;;  %s2366_s30 = smov (!%p48_p11, %s50_s30), %s1780_s23 }
  0x2f   : > { %p1925_p1 = por %p111_p13, %p110_p12  ;;  %p52_p2 = scmp.ge.s32.totalorder %s2366_s30, 2 }
  0x30   : > { %s82_s12 = sld [smem:[#allocation6 + %s1916_s10]]  ;;  %p289_p4 = scmp.ne.s32.totalorder %s1748_s15, %s1744_s14 }
  0x31   : > { %p84_p0 = scmp.lt.s32.totalorder %s1776_s22, %s83_s29  ;;  %s2368_s30 = smov (%p52_p2, %s2366_s30), 0 }
  0x32   : > { %2319 = sst [smem:[#allocation22_spill]] %s2368_s30  ;;  %s279_s29 = sadd.s32 1, %s1748_s15 }
  0x33   : > { %s85_s13 = scalar_select %p84_p0, 1, 0 }
  0x34   : > { %s1385_s9 = sshll.u32 %s2368_s30, 2  ;;  %s92_s28 = sld [smem:[#allocation5 + %s2368_s30]] }
  0x35   : > { %s86_s0 = smul.u32 %s1772_s21, %s85_s13  ;;  %s87_s25 = ssub.s32 1, %s85_s13 }
  0x36   : > { %s90_s8 = sadd.s32 %s1385_s9, %s2364_s27  ;;  %s276_s5 = ssub.s32 %s1780_s23, %s2368_s30 }
  0x37   : > { %s91_s6 = sld [smem:[#allocation6 + %s90_s8]]  ;;  %p277_p3 = scmp.eq.s32.totalorder %s276_s5, 0 }
  0x38   : > { %s2320_s4 = sadd.s32 4294967295, %s1784_s24   ;;  %p295_p6 = scmp.ne.s32.totalorder %s1744_s14, %s1740_s1 }
  0x39   : > { %p290_p5 = scmp.eq.s32.totalorder %s2320_s4, 15  ;;  %s2323_s18 = sadd.s32 4294967294, %s1784_s24  }
  0x3a   : > { %s1946_s7 = scalar_select %p277_p3, %s1748_s15, %s279_s29  }
  0x3b   : > { %p93_p7 = scmp.lt.s32.totalorder %s2364_s27, %s92_s28  ;;  %p1949_p8 = por %p290_p5, %p289_p4 }
  0x3c   : > { %2321 = sst [smem:[#allocation23_spill]] %s1946_s7  ;;  %p296_p9 = scmp.eq.s32.totalorder %s2323_s18, 15 }
  0x3d   : > { %s94_s13 = scalar_select %p93_p7, 1, 0 }
  0x3e   : > { %s88_s9 = sadd.s32 %s87_s25, %s86_s0  ;;  %p1955_p10 = por %p296_p9, %p295_p6 }
  0x3f   : > { %s95_s5 = smul.u32 %s94_s13, %s2362_s26  ;;  %s96_s30 = ssub.s32 1, %s94_s13 }
  0x40   : > { %s98_s4 = ssub.s32 %s82_s12, %s91_s6  ;;  %s103_s7 = sadd.s32 1, %s1756_s17 }
  0x41   : > { %s97_s1 = sadd.s32 %s96_s30, %s95_s5  ;;  %p1393_p12 = scmp.ge.s32.totalorder %s1784_s24, 16 }
  0x42   : > { %s99_s19 = ssub.s32 %s88_s9, %s97_s1 }
  0x43   : > { %s100_s29 = sor.u32 %s99_s19, %s98_s4 }
  0x44   : > { %p101_p11 = scmp.eq.s32.totalorder %s100_s29, 0  ;;  %312 = sbr.rel (%p1393_p12) target bundleno = 95 (0x5f), region = 16 }
  0x46   : > { %s1962_s28 = scalar_select %p101_p11, %s1756_s17, %s103_s7  }
  0x48   : > { %2325 = sst [smem:[#allocation24_spill]] %s1962_s28 }
  0x49   : > { %324 = sbr.rel (!%p1925_p1) target bundleno = 95 (0x5f), region = 24  ;;  %s332_s18 = sld [smem:[#allocation5 + %s1780_s23]] (%p1925_p1) }
  0x4a   : > { %s331_s6 = sld [smem:[#allocation6 + %s1916_s10]] (%p1925_p1)  ;;  %s326_s1 = sand.u32 (%p1925_p1), 1, %s1756_s17  }
  0x4b   : > { %s1394_s12 = sshll.u32 (%p1925_p1), %s326_s1, 5  ;;  %s2326_s3 = sld [smem:[#allocation26_spill]] (%p1925_p1) }
  0x4c   : > { %s328_s29 = scalar_lea.vmem (%p1925_p1), [#allocation7], %s1394_s12 }
  0x4f   : > { %p333_p13 = scmp.lt.s32.totalorder %s1776_s22, %s332_s18 }
  0x50   : > { %s1396_s25 = sshll.u32 %s331_s6, 4 }
  0x51   : > { %s334_s19 = scalar_select %p333_p13, 1, 0 }
  0x53   : > { %s335_s30 = smul.u32 %s1772_s21, %s334_s19  ;;  %s336_s7 = ssub.s32 1, %s334_s19 }
  0x55   : > { %s337_s0 = sadd.s32 %s336_s7, %s335_s30 }
  0x56   : > { %s339_s13 = sadd.s32 %s1396_s25, %s337_s0 }
  0x57   : > { %s1397_s9 = sshll.u32 %s339_s13, 2 }
  0x58   : > { %s341_s4 = scalar_lea.vmem %s2326_s3, %s1397_s9 }
  0x59   : > { %v358_v0 = vld [vmem:[%s341_s4] sm:$0xf]  ;;  %v360_v1 = vld [vmem:[%s341_s4 + $0x8] sm:$0xf]  ;;  %v362_v2 = vld [vmem:[%s341_s4 + $0x10] sm:$0xf] }
  0x5a   : > { %359 = vst [vmem:[%s328_s29] sm:$0xf] %v358_v0  ;;  %361 = vst [vmem:[%s328_s29 + $0x4] sm:$0xf] %v360_v1  ;;  %v364_v3 = vld [vmem:[%s341_s4 + $0x18] sm:$0xf] }
  0x5b   : > { %363 = vst [vmem:[%s328_s29 + $0x8] sm:$0xf] %v362_v2  ;;  %v366_v4 = vld [vmem:[%s341_s4 + $0x20] sm:$0xf]  ;;  %v368_v5 = vld [vmem:[%s341_s4 + $0x28] sm:$0xf] }
  0x5c   : > { %365 = vst [vmem:[%s328_s29 + $0xc] sm:$0xf] %v364_v3  ;;  %367 = vst [vmem:[%s328_s29 + $0x10] sm:$0xf] %v366_v4  ;;  %v370_v6 = vld [vmem:[%s341_s4 + $0x30] sm:$0xf] }
  0x5d   : > { %369 = vst [vmem:[%s328_s29 + $0x14] sm:$0xf] %v368_v5  ;;  %v372_v7 = vld [vmem:[%s341_s4 + $0x38] sm:$0xf]  ;;  %371 = vst [vmem:[%s328_s29 + $0x18] sm:$0xf] %v370_v6 }
  0x5e   : > { %373 = vst [vmem:[%s328_s29 + $0x1c] sm:$0xf] %v372_v7 }
  0x5f PF: > { %p1398_p0 = scmp.ge.s32.totalorder %s1784_s24, 1  ;;  %p492_p1 = scmp.lt.s32.totalorder %s1784_s24, 17 }
  0x61   : > { %p493_p2 = pnand %p1398_p0, %p492_p1 }
  0x62   : > { %s2327_s10 = sld [smem:[#allocation16_spill]] (!%p493_p2)  ;;  %s499_s6 = sand.u32 (!%p493_p2), 1, %s1752_s16  }
  0x63   : > { %496 = sbr.rel (%p493_p2) target bundleno = 1085 (0x43d), region = 81  ;;  %s2328_s18 = sld [smem:[#allocation15_spill]] (!%p493_p2) }
  0x64   : > { %s2293_s1 = sand.u32 (!%p493_p2), 1, %s1744_s14   ;;  %s1979_s19 = sshll.u32 (!%p493_p2), %s499_s6, 5 }
  0x65   : > { %s1983_s25 = sshll.u32 (!%p493_p2), %s2293_s1, 6  ;;  %s1401_s30 = sshll.u32 (!%p493_p2), %s1768_s20, 3 }
  0x66   : > { %s1403_s7 = sshll.u32 (!%p493_p2), %s1768_s20, 2  ;;  %p579_p3 = scmp.lt.s32.totalorder (!%p493_p2), %s1401_s30, 15 }
  0x67   : > { %s596_s13 = sld [smem:[#allocation5 + %s1768_s20]] (!%p493_p2) }
  0x68   : > { %s1988_s12 = sadd.s32 %s2327_s10, %s1403_s7  ;;  %s2370_s30 = smov (!%p579_p3, %s1401_s30), 15 }
  0x69   : > { %s595_s0 = sld [smem:[#allocation6 + %s1988_s12]]  ;;  %p663_p4 = scmp.eq.s32.totalorder %s2327_s10, 0 }
  0x6a   : > { %s1402_s16 = sshll.u32 %s2370_s30, 2  ;;  %p664_p5 = scmp.eq.s32.totalorder %s2328_s18, 0 }
  0x6b   : > { %s2329_s11 = sld [smem:[#allocation25_spill]]  ;;  %s1411_s6 = sshll.u32 %s2370_s30, 3 }
  0x6c   : > { %s621_s29 = sld [smem:[#allocation5 + %s1768_s20]]  ;;  %p2005_p7 = pnand %p664_p5, %p663_p4 }
  0x6d   : > { %s2330_s3 = sld [smem:[#allocation30_spill]]  ;;  %p597_p9 = scmp.lt.s32.totalorder %s2327_s10, %s596_s13 }
  0x6e   : > { %s620_s23 = sld [smem:[#allocation6 + %s1988_s12]]  ;;  %s2036_s7 = scalar_lea.vmem [#allocation8], %s1983_s25 }
  0x6f   : > { %p602_p6 = scmp.lt.s32.totalorder %s595_s0, 3 }
  0x70   : > { %s598_s22 = scalar_select %p597_p9, 1, 0 }
  0x71   : > { %s1997_s4 = scalar_lea.vmem %s2329_s11, %s1402_s16  ;;  %s2372_s0 = smov (!%p602_p6, %s595_s0), 3 }
  0x72   : > { %p622_p11 = scmp.lt.s32.totalorder %s2327_s10, %s621_s29  ;;  %s648_s16 = sld [smem:[#allocation6 + %s1988_s12]] }
  0x73   : > { %s2003_s27 = scalar_lea.vmem %s2330_s3, %s1411_s6  ;;  %s599_s9 = smul.u32 %s2328_s18, %s598_s22 }
  0x74   : > { %s600_s5 = ssub.s32 1, %s598_s22  ;;  %s1404_s21 = sshll.u32 %s2372_s0, 1 }
  0x75   : > { %s623_s30 = scalar_select %p622_p11, 1, 0 }
  0x76   : > { %s601_s11 = sadd.s32 %s600_s5, %s599_s9  ;;  %p628_p13 = scmp.lt.s32.totalorder %s620_s23, 3 }
  0x77   : > { %p604_p12 = scmp.lt.s32.totalorder %s601_s11, 1  ;;  %s624_s28 = smul.u32 %s2328_s18, %s623_s30 }
  0x78   : > { %s625_s1 = ssub.s32 1, %s623_s30  ;;  %s2332_s29 = sld [smem:[#allocation27_spill]] }
  0x79   : > { %s2374_s11 = smov (!%p604_p12, %s601_s11), 1  ;;  %s626_s3 = sadd.s32 %s625_s1, %s624_s28 }
  0x7a   : > { %s2015_s6 = sadd.s32 %s1404_s21, %s2374_s11  ;;  %s1406_s13 = sshll.u32 %s626_s3, 4 }
  0x7b   : > { %p630_p0 = scmp.lt.s32.totalorder %s1406_s13, 31  ;;  %s2376_s23 = smov (!%p628_p13, %s620_s23), 3 }
  0x7c   : > { %s1407_s22 = sshll.u32 %s2376_s23, 5  ;;  %p649_p1 = scmp.lt.s32.totalorder %s648_s16, 3 }
  0x7d   : > { %s2378_s13 = smov (!%p630_p0, %s1406_s13), 31  ;;  %s2333_s30 = sld [smem:[#allocation28_spill]] }
  0x7e   : > { %s608_s17 = scalar_lea.vmem %s2332_s29, %s2015_s6  ;;  %s633_s18 = sadd.s32 %s1407_s22, %s2378_s13 }
  0x7f   : > { %s1408_s0 = sshll.u32 %s633_s18, 2  ;;  %s2380_s16 = smov (!%p649_p1, %s648_s16), 3 }
  0x80   : > { %s2334_s11 = sld [smem:[#allocation29_spill]]  ;;  %s2033_s3 = scalar_lea.vmem [#allocation7], %s1979_s19 }
  0x82   : > { %668 = sbr.rel (%p2005_p7) target bundleno = 140 (0x8c), region = 89 }
  0x83   : > { %s2024_s15 = scalar_lea.vmem %s2333_s30, %s1408_s0 }
  0x86   : > { %s651_s1 = scalar_lea.vmem %s2334_s11, %s2380_s16 }
  0x87   : > { %vm669_vm0 = vcmask 523264   ;;  %v1788_v8 = vmov 0.0  }
  0x88   : > { %670 = vst.msk [vmem:[#allocation2] sm:$0xff] %vm669_vm0, %v1788_v8  ;;  %671 = vst.msk [vmem:[#allocation2 + $0x8] sm:$0xff] %vm669_vm0, %v1788_v8 }
  0x89   : > { %672 = vst.msk [vmem:[#allocation2 + $0x10] sm:$0xff] %vm669_vm0, %v1788_v8  ;;  %673 = vst.msk [vmem:[#allocation2 + $0x18] sm:$0xff] %vm669_vm0, %v1788_v8 }
  0x8a   : > { %674 = vst.msk [vmem:[#allocation2 + $0x20] sm:$0xff] %vm669_vm0, %v1788_v8  ;;  %675 = vst.msk [vmem:[#allocation2 + $0x28] sm:$0xff] %vm669_vm0, %v1788_v8 }
  0x8b   : > { %676 = vst.msk [vmem:[#allocation2 + $0x30] sm:$0xff] %vm669_vm0, %v1788_v8  ;;  %677 = vst.msk [vmem:[#allocation2 + $0x38] sm:$0xff] %vm669_vm0, %v1788_v8 }
  0x8c PF: > { %s678_s23 = sld [smem:[#allocation5 + %s1768_s20]] }
  0x8d   : > { %s2335_s19 = sld [smem:[#allocation16_spill]] }
  0x93   : > { %p1412_p2 = scmp.ge.s32.totalorder %s2335_s19, %s678_s23 }
  0x94   : > { %s685_s25 = sld [smem:[#allocation6 + %s1988_s12]] (!%p1412_p2) }
  0x95   : > { %682 = sbr.rel (%p1412_p2) target bundleno = 1038 (0x40e), region = 93  ;;  %s2336_s26 = sld [smem:[#allocation15_spill]] (!%p1412_p2) }
  0x9b   : > { %p1414_p3 = scmp.ne.s32.totalorder %s2336_s26, 0 }
  0x9d   : > { %688 = sbr.rel (%p1414_p3) target bundleno = 320 (0x140), region = 97 }
  0xa2   : > { %v697_v9 = vlaneseq  ;;  %v691_v10 = vld [vmem:[%s2003_s27 + $0x10] sm:$0xff]  ;;  %v699_v11 = vstv %s685_s25  ;;  %v689_v13 = vld [vmem:[%s2003_s27] sm:$0xff]  ;;  %v692_v14 = vld [vmem:[%s2003_s27 + $0x18] sm:$0xff]  ;;  %vm709_vm1 = vcmask 31744   ;;  %vm734_vm3 = vcmask 7168  }
  0xa3   : > { %v690_v15 = vld [vmem:[%s2003_s27 + $0x8] sm:$0xff]  ;;  %v693_v24 = vld [vmem:[%s2003_s27 + $0x20] sm:$0xff]  ;;  %v696_v29 = vld [vmem:[%s2003_s27 + $0x38] sm:$0xff] }
  0xa4   : > { %v698_v12 = vand.u32 127, %v697_v9  ;;  %v694_v23 = vld [vmem:[%s2003_s27 + $0x28] sm:$0xff]  ;;  %v695_v30 = vld [vmem:[%s2003_s27 + $0x30] sm:$0xff] }
  0xa6   : > { %vm2050_vm2 = vcmp.eq.s32.totalorder %v698_v12, %v699_v11 }
  0xa7   : > { %v703_v17 = vsel %vm2050_vm2, %v691_v10, 0.0  ;;  %v701_v18 = vsel %vm2050_vm2, %v689_v13, 0.0  ;;  %v704_v19 = vsel %vm2050_vm2, %v692_v14, 0.0  ;;  %v702_v20 = vsel %vm2050_vm2, %v690_v15, 0.0 }
  0xa8   : > { %v716_v21 = vsel %vm709_vm1, %v703_v17, 0.0  ;;  %v710_v22 = vsel %vm709_vm1, %v701_v18, 0.0  ;;  %v719_v25 = vsel %vm709_vm1, %v704_v19, 0.0  ;;  %v713_v26 = vsel %vm709_vm1, %v702_v20, 0.0 }
  0xa9   : > { %717 = vadd.xlane.f32.xlu1 %v716_v21  ;;  %711 = vadd.xlane.f32.xlu0 %v710_v22  ;;  %v706_v27 = vsel %vm2050_vm2, %v694_v23, 0.0  ;;  %v705_v28 = vsel %vm2050_vm2, %v693_v24, 0.0  ;;  %v708_v33 = vsel %vm2050_vm2, %v696_v29, 0.0  ;;  %v707_v34 = vsel %vm2050_vm2, %v695_v30, 0.0 }
  0xaa   : > { %v725_v31 = vsel %vm709_vm1, %v706_v27, 0.0  ;;  %v722_v32 = vsel %vm709_vm1, %v705_v28, 0.0  ;;  %v731_v35 = vsel %vm709_vm1, %v708_v33, 0.0  ;;  %v728_v36 = vsel %vm709_vm1, %v707_v34, 0.0 }
  0xad   : > { %720 = vadd.xlane.f32.xlu1 %v719_v25  ;;  %714 = vadd.xlane.f32.xlu0 %v713_v26 }
  0xb1   : > { %726 = vadd.xlane.f32.xlu1 %v725_v31  ;;  %723 = vadd.xlane.f32.xlu0 %v722_v32 }
  0xb5   : > { %732 = vadd.xlane.f32.xlu1 %v731_v35  ;;  %729 = vadd.xlane.f32.xlu0 %v728_v36 }
 0x132   : > { %v718_v37 = vpop.xlane.xlu1 %717  ;;  %v712_v38 = vpop.xlane.xlu0 %711 }
 0x133   : > { %737 = vst.msk [vmem:[#allocation3 + $0x10] sm:$0xff] %vm734_vm3, %v718_v37  ;;  %735 = vst.msk [vmem:[#allocation3] sm:$0xff] %vm734_vm3, %v712_v38 }
 0x136   : > { %v721_v39 = vpop.xlane.xlu1 %720  ;;  %v715_v40 = vpop.xlane.xlu0 %714 }
 0x137   : > { %738 = vst.msk [vmem:[#allocation3 + $0x18] sm:$0xff] %vm734_vm3, %v721_v39  ;;  %736 = vst.msk [vmem:[#allocation3 + $0x8] sm:$0xff] %vm734_vm3, %v715_v40 }
 0x13a   : > { %v727_v41 = vpop.xlane.xlu1 %726  ;;  %v724_v42 = vpop.xlane.xlu0 %723 }
 0x13b   : > { %740 = vst.msk [vmem:[#allocation3 + $0x28] sm:$0xff] %vm734_vm3, %v727_v41  ;;  %739 = vst.msk [vmem:[#allocation3 + $0x20] sm:$0xff] %vm734_vm3, %v724_v42 }
 0x13e   : > { %v733_v43 = vpop.xlane.xlu1 %732  ;;  %v730_v44 = vpop.xlane.xlu0 %729 }
 0x13f   : > { %742 = vst.msk [vmem:[#allocation3 + $0x38] sm:$0xff] %vm734_vm3, %v733_v43  ;;  %741 = vst.msk [vmem:[#allocation3 + $0x30] sm:$0xff] %vm734_vm3, %v730_v44 }
 0x140 PF: > { %v2090_v45 = vld [vmem:[#allocation3] sm:$0xff]  ;;  %v2092_v46 = vld [vmem:[#allocation3 + $0x8] sm:$0xff]  ;;  %v2094_v47 = vld [vmem:[#allocation3 + $0x10] sm:$0xff]  ;;  %vm818_vm4 = vcmask 523264  }
 0x141   : > { %v2096_v48 = vld [vmem:[#allocation3 + $0x18] sm:$0xff]  ;;  %v1615_v54 = vld [vmem:[%s2033_s3 + $0x10] sm:$0xff]   ;;  %v1616_v55 = vld [vmem:[%s2033_s3 + $0x8] sm:$0xff]  }
 0x142   : > { %v2098_v49 = vld [vmem:[#allocation3 + $0x20] sm:$0xff]  ;;  %v2100_v50 = vld [vmem:[#allocation3 + $0x28] sm:$0xff]  ;;  %v1614_v53 = vld [vmem:[%s2033_s3 + $0x18] sm:$0xff]  }
 0x143   : > { %1464 = vmatprep.subr.bf16.mxu0 %v1614_v53  ;;  %v1618_v56 = vld [vmem:[%s1997_s4] sm:$0xff]   ;;  %v1622_v58 = vld [vmem:[%s2024_s15 + $0x38] sm:$0xff]   ;;  %v1623_v59 = vld [vmem:[%s2024_s15 + $0x30] sm:$0xff]  }
 0x144   : > { %1465 = vmatpush3.bf16.msra.mxu0 %v1614_v53  ;;  %1472 = vmatprep.mubr.msk.bf16.mxu0 %vm818_vm4, %v1618_v56  ;;  %v1617_v57 = vld [vmem:[%s2033_s3] sm:$0xff]   ;;  %v1624_v60 = vld [vmem:[%s2024_s15 + $0x28] sm:$0xff]   ;;  %v1620_v62 = vld [vmem:[%s1997_s4 + $0x10] sm:$0xff]  }
 0x145   : > { %1466 = vmatprep.subr.bf16.mxu0 %v1615_v54  ;;  %1480 = vmatprep.subr.bf16.mxu1 %v1622_v58  ;;  %v1619_v61 = vld [vmem:[%s1997_s4 + $0x8] sm:$0xff]   ;;  %v1625_v63 = vld [vmem:[%s2024_s15 + $0x20] sm:$0xff]   ;;  %v1626_v0 = vld [vmem:[%s2024_s15 + $0x18] sm:$0xff]  }
 0x146   : > { %v2102_v51 = vld [vmem:[#allocation3 + $0x30] sm:$0xff]  ;;  %v2104_v52 = vld [vmem:[#allocation3 + $0x38] sm:$0xff]  ;;  %1481 = vmatpush3.bf16.msra.mxu1 %v1622_v58  ;;  %v1628_v3 = vld [vmem:[%s2024_s15 + $0x8] sm:$0xff]  }
 0x147   : > { %1482 = vmatprep.subr.bf16.mxu1 %v1623_v59  ;;  %v1621_v1 = vld [vmem:[%s1997_s4 + $0x18] sm:$0xff]   ;;  %v1627_v2 = vld [vmem:[%s2024_s15 + $0x10] sm:$0xff]   ;;  %v1629_v4 = vld [vmem:[%s2024_s15] sm:$0xff]  }
 0x148   : > { %1467 = vmatpush3.bf16.msra.mxu0 %v1615_v54  ;;  %v1415_v7 = vld [vmem:[%s608_s17] ss:$0 sm:$0xff] }
 0x149   : > { %1468 = vmatprep.subr.bf16.mxu0 %v1616_v55 }
 0x14a   : > { %1483 = vmatpush3.bf16.msra.mxu1 %v1623_v59 }
 0x14b   : > { %1484 = vmatprep.subr.bf16.mxu1 %v1624_v60 }
 0x14c   : > { %1469 = vmatpush3.bf16.msra.mxu0 %v1616_v55 }
 0x14d   : > { %1470 = vmatprep.subr.bf16.mxu0 %v1617_v57 }
 0x14e   : > { %1485 = vmatpush3.bf16.msra.mxu1 %v1624_v60 }
 0x14f   : > { %1486 = vmatprep.subr.bf16.mxu1 %v1625_v63 }
 0x150   : > { %1471 = vmatpush3.bf16.msra.mxu0 %v1617_v57 }
 0x152   : > { %1487 = vmatpush3.bf16.msra.mxu1 %v1625_v63 }
 0x153   : > { %1473 = vmatmul.mubr.msk.bf16.vlgmr.msra.gmra.mxu0 %vm818_vm4, %v1619_v61  ;;  %1488 = vmatprep.subr.bf16.mxu1 %v1626_v0 }
 0x154   : > { %1476 = vmatprep.mubr.msk.bf16.mxu0 %vm818_vm4, %v1620_v62 }
 0x156   : > { %1489 = vmatpush3.bf16.msra.mxu1 %v1626_v0 }
 0x157   : > { %1490 = vmatprep.subr.bf16.mxu1 %v1627_v2 }
 0x15a   : > { %1491 = vmatpush3.bf16.msra.mxu1 %v1627_v2 }
 0x15b   : > { %1477 = vmatmul.mubr.msk.bf16.gmra.mxu0 %vm818_vm4, %v1621_v1  ;;  %1492 = vmatprep.subr.bf16.mxu1 %v1628_v3 }
 0x15e   : > { %1493 = vmatpush3.bf16.msra.mxu1 %v1628_v3 }
 0x15f   : > { %1494 = vmatprep.subr.bf16.mxu1 %v1629_v4 }
 0x162   : > { %1495 = vmatpush3.bf16.msra.mxu1 %v1629_v4 }
 0x213   : > { %v1474_v5 = vpop.f32.mrf.mxu0 }
 0x214   : > { %v874_v11 = vadd.f32 %v1474_v5, %v1415_v7 }
 0x215   : > { %v865_v6 = vpop.f32.mrf.mxu0 }
 0x216   : > { %v866_v9 = vadd.f32 %v1415_v7, %v865_v6  ;;  %v898_v18 = vmax.f32 %v874_v11, 0.0 }
 0x217   : > { %v1475_v8 = vpop.f32.mrf.mxu0 }
 0x218   : > { %v877_v10 = vadd.f32 %v1475_v8, %v1415_v7  ;;  %v896_v16 = vmax.f32 %v866_v9, 0.0 }
 0x219   : > { %v868_v12 = vpop.f32.mrf.mxu0 }
 0x21a   : > { %v869_v13 = vadd.f32 %v1415_v7, %v868_v12  ;;  %v899_v14 = vmax.f32 %v877_v10, 0.0 }
 0x21b   : > { %v1478_v15 = vpop.f32.mrf.mxu0 }
 0x21c   : > { %v897_v17 = vmax.f32 %v869_v13, 0.0  ;;  %v905_v21 = vpack.c.bf16 %v899_v14, %v898_v18  ;;  %v890_v25 = vadd.f32 %v1478_v15, %v1415_v7 }
 0x21d   : > { %v881_v19 = vpop.f32.mrf.mxu0 }
 0x21e   : > { %v904_v20 = vpack.c.bf16 %v897_v17, %v896_v16  ;;  %v882_v23 = vadd.f32 %v1415_v7, %v881_v19  ;;  %v902_v31 = vmax.f32 %v890_v25, 0.0 }
 0x21f   : > { %v1479_v22 = vpop.f32.mrf.mxu0 }
 0x220   : > { %v893_v24 = vadd.f32 %v1479_v22, %v1415_v7  ;;  %1496 = vmatprep.mubr.bf16.mxu1 %v904_v20  ;;  %v900_v29 = vmax.f32 %v882_v23, 0.0 }
 0x221   : > { %v884_v26 = vpop.f32.mrf.mxu0  ;;  %1497 = vmatmul.mubr.bf16.vlgmr.msra.gmra.mxu1 %v905_v21 }
 0x222   : > { %v885_v27 = vadd.f32 %v1415_v7, %v884_v26  ;;  %v903_v28 = vmax.f32 %v893_v24, 0.0 }
 0x224   : > { %v901_v30 = vmax.f32 %v885_v27, 0.0  ;;  %v907_v33 = vpack.c.bf16 %v903_v28, %v902_v31 }
 0x226   : > { %v906_v32 = vpack.c.bf16 %v901_v30, %v900_v29 }
 0x228   : > { %1500 = vmatprep.mubr.bf16.mxu1 %v906_v32 }
 0x229   : > { %1501 = vmatmul.mubr.bf16.gmra.mxu1 %v907_v33 }
 0x2e1   : > { %v2131_v34 = vpop.f32.mrf.mxu1 }
 0x2e3   : > { %v2133_v35 = vpop.f32.mrf.mxu1 }
 0x2e5   : > { %v2135_v36 = vpop.f32.mrf.mxu1 }
 0x2e7   : > { %v2137_v37 = vpop.f32.mrf.mxu1 }
 0x2e9   : > { %v2139_v38 = vpop.f32.mrf.mxu1 }
 0x2eb   : > { %v2141_v39 = vpop.f32.mrf.mxu1  ;;  %1039 = sbr.rel (%p1414_p3) target bundleno = 895 (0x37f), region = 101 }
 0x2ed   : > { %v2143_v40 = vpop.f32.mrf.mxu1 }
 0x2ef   : > { %v2145_v41 = vpop.f32.mrf.mxu1 }
 0x2f0   : > { %v1789_v42 = vmov 0   ;;  %v1437_v43 = vld [vmem:[%s651_s1] ss:$0 sm:$0xff]  ;;  %v1042_v53 = vld [vmem:[#allocation2 + $0x10] sm:$0xff]  ;;  %v1043_v61 = vld [vmem:[#allocation2 + $0x18] sm:$0xff] }
 0x2f1   : > { %1631 = vset.pattern.permute.xlu1 %v1789_v42  ;;  %1630 = vset.pattern.permute.xlu0 %v1789_v42  ;;  %v1040_v55 = vld [vmem:[#allocation2] sm:$0xff]  ;;  %v1041_v63 = vld [vmem:[#allocation2 + $0x8] sm:$0xff]  ;;  %v1047_v13 = vld [vmem:[#allocation2 + $0x38] sm:$0xff] }
 0x2f2   : > { %1061 = vperm.xlu1 %1631, %v2094_v47   ;;  %1051 = vperm.xlu0 %1630, %v2090_v45   ;;  %v1045_v5 = vld [vmem:[#allocation2 + $0x28] sm:$0xff]  ;;  %v1044_v7 = vld [vmem:[#allocation2 + $0x20] sm:$0xff]  ;;  %v1046_v15 = vld [vmem:[#allocation2 + $0x30] sm:$0xff] }
 0x2f6   : > { %1066 = vperm.xlu1 %1631, %v2096_v48   ;;  %1056 = vperm.xlu0 %1630, %v2092_v46  }
 0x2fa   : > { %1076 = vperm.xlu1 %1631, %v2100_v50   ;;  %1071 = vperm.xlu0 %1630, %v2098_v49  }
 0x2fe   : > { %1086 = vperm.xlu1 %1631, %v2104_v52   ;;  %1081 = vperm.xlu0 %1630, %v2102_v51  }
 0x36d   : > { %v1062_v44 = vpop.permute.xlu1 %1061  ;;  %v1052_v54 = vpop.permute.xlu0 %1051 }
 0x36e   : > { %v1097_v56 = vmul.f32 %v1437_v43, %v1062_v44  ;;  %v1095_v57 = vmul.f32 %v1437_v43, %v1052_v54 }
 0x370   : > { %v1105_v58 = vadd.f32 %v1097_v56, %v1042_v53  ;;  %v1103_v59 = vadd.f32 %v1095_v57, %v1040_v55 }
 0x371   : > { %v1067_v60 = vpop.permute.xlu1 %1066  ;;  %v1057_v62 = vpop.permute.xlu0 %1056 }
 0x372   : > { %1113 = vst.msk [vmem:[#allocation2 + $0x10] sm:$0xff] %vm818_vm4, %v1105_v58  ;;  %1111 = vst.msk [vmem:[#allocation2] sm:$0xff] %vm818_vm4, %v1103_v59  ;;  %v1098_v0 = vmul.f32 %v1437_v43, %v1067_v60  ;;  %v1096_v1 = vmul.f32 %v1437_v43, %v1057_v62 }
 0x374   : > { %v1106_v2 = vadd.f32 %v1098_v0, %v1043_v61  ;;  %v1104_v3 = vadd.f32 %v1096_v1, %v1041_v63 }
 0x375   : > { %v1077_v4 = vpop.permute.xlu1 %1076  ;;  %v1072_v6 = vpop.permute.xlu0 %1071 }
 0x376   : > { %1114 = vst.msk [vmem:[#allocation2 + $0x18] sm:$0xff] %vm818_vm4, %v1106_v2  ;;  %1112 = vst.msk [vmem:[#allocation2 + $0x8] sm:$0xff] %vm818_vm4, %v1104_v3  ;;  %v1100_v8 = vmul.f32 %v1437_v43, %v1077_v4  ;;  %v1099_v9 = vmul.f32 %v1437_v43, %v1072_v6 }
 0x378   : > { %v1108_v10 = vadd.f32 %v1100_v8, %v1045_v5  ;;  %v1107_v11 = vadd.f32 %v1099_v9, %v1044_v7 }
 0x379   : > { %v1087_v12 = vpop.permute.xlu1 %1086  ;;  %v1082_v14 = vpop.permute.xlu0 %1081 }
 0x37a   : > { %1116 = vst.msk [vmem:[#allocation2 + $0x28] sm:$0xff] %vm818_vm4, %v1108_v10  ;;  %1115 = vst.msk [vmem:[#allocation2 + $0x20] sm:$0xff] %vm818_vm4, %v1107_v11  ;;  %v1102_v16 = vmul.f32 %v1437_v43, %v1087_v12  ;;  %v1101_v17 = vmul.f32 %v1437_v43, %v1082_v14 }
 0x37c   : > { %v1110_v18 = vadd.f32 %v1102_v16, %v1047_v13  ;;  %v1109_v19 = vadd.f32 %v1101_v17, %v1046_v15 }
 0x37e   : > { %1118 = vst.msk [vmem:[#allocation2 + $0x38] sm:$0xff] %vm818_vm4, %v1110_v18  ;;  %1117 = vst.msk [vmem:[#allocation2 + $0x30] sm:$0xff] %vm818_vm4, %v1109_v19 }
 0x37f PF: > { %v1790_v20 = vmov 0   ;;  %v1121_v22 = vld [vmem:[#allocation2 + $0x10] sm:$0xff]  ;;  %v1119_v24 = vld [vmem:[#allocation2] sm:$0xff] }
 0x380   : > { %1633 = vset.pattern.permute.xlu1 %v1790_v20  ;;  %1632 = vset.pattern.permute.xlu0 %v1790_v20 }
 0x381   : > { %1139 = vperm.xlu1 %1633, %v2094_v47   ;;  %1129 = vperm.xlu0 %1632, %v2090_v45   ;;  %v1124_v30 = vld [vmem:[#allocation2 + $0x28] sm:$0xff]  ;;  %v1123_v32 = vld [vmem:[#allocation2 + $0x20] sm:$0xff] }
 0x385   : > { %1144 = vperm.xlu1 %1633, %v2096_v48   ;;  %1134 = vperm.xlu0 %1632, %v2092_v46   ;;  %v1122_v46 = vld [vmem:[#allocation2 + $0x18] sm:$0xff] }
 0x389   : > { %1154 = vperm.xlu1 %1633, %v2100_v50   ;;  %1149 = vperm.xlu0 %1632, %v2098_v49   ;;  %v1120_v50 = vld [vmem:[#allocation2 + $0x8] sm:$0xff] }
 0x38d   : > { %1164 = vperm.xlu1 %1633, %v2104_v52   ;;  %1159 = vperm.xlu0 %1632, %v2102_v51  }
 0x3fc   : > { %v1140_v21 = vpop.permute.xlu1 %1139  ;;  %v1130_v23 = vpop.permute.xlu0 %1129 }
 0x3fd   : > { %v1169_v47 = vmul.f32 %v2131_v34, %v1140_v21  ;;  %v1167_v45 = vmul.f32 %v1130_v23, %v2133_v35 }
 0x3ff   : > { %v1177_v25 = vadd.f32 %v1169_v47, %v1121_v22  ;;  %v1175_v48 = vadd.f32 %v1167_v45, %v1119_v24 }
 0x400   : > { %v1145_v26 = vpop.permute.xlu1 %1144  ;;  %v1135_v27 = vpop.permute.xlu0 %1134 }
 0x401   : > { %1185 = vst.msk [vmem:[#allocation2 + $0x10] sm:$0xff] %vm818_vm4, %v1177_v25  ;;  %1183 = vst.msk [vmem:[#allocation2] sm:$0xff] %vm818_vm4, %v1175_v48  ;;  %v1170_v49 = vmul.f32 %v2135_v36, %v1145_v26  ;;  %v1168_v51 = vmul.f32 %v1135_v27, %v2137_v37  ;;  %v1126_v36 = vld [vmem:[#allocation2 + $0x38] sm:$0xff]  ;;  %v1125_v37 = vld [vmem:[#allocation2 + $0x30] sm:$0xff] }
 0x403   : > { %v1178_v52 = vadd.f32 %v1170_v49, %v1122_v46  ;;  %v1176_v28 = vadd.f32 %v1168_v51, %v1120_v50 }
 0x404   : > { %v1155_v29 = vpop.permute.xlu1 %1154  ;;  %v1150_v31 = vpop.permute.xlu0 %1149 }
 0x405   : > { %1186 = vst.msk [vmem:[#allocation2 + $0x18] sm:$0xff] %vm818_vm4, %v1178_v52  ;;  %1184 = vst.msk [vmem:[#allocation2 + $0x8] sm:$0xff] %vm818_vm4, %v1176_v28  ;;  %v1172_v33 = vmul.f32 %v1155_v29, %v2145_v41  ;;  %v1171_v34 = vmul.f32 %v1150_v31, %v2141_v39 }
 0x407   : > { %v1180_v35 = vadd.f32 %v1172_v33, %v1124_v30  ;;  %v1179_v42 = vadd.f32 %v1171_v34, %v1123_v32 }
 0x408   : > { %v1165_v43 = vpop.permute.xlu1 %1164  ;;  %v1160_v44 = vpop.permute.xlu0 %1159 }
 0x409   : > { %1188 = vst.msk [vmem:[#allocation2 + $0x28] sm:$0xff] %vm818_vm4, %v1180_v35  ;;  %1187 = vst.msk [vmem:[#allocation2 + $0x20] sm:$0xff] %vm818_vm4, %v1179_v42  ;;  %v1174_v53 = vmul.f32 %v2143_v40, %v1165_v43  ;;  %v1173_v54 = vmul.f32 %v2139_v38, %v1160_v44 }
 0x40b   : > { %v1182_v55 = vadd.f32 %v1174_v53, %v1126_v36  ;;  %v1181_v56 = vadd.f32 %v1173_v54, %v1125_v37 }
 0x40d   : > { %1190 = vst.msk [vmem:[#allocation2 + $0x38] sm:$0xff] %vm818_vm4, %v1182_v55  ;;  %1189 = vst.msk [vmem:[#allocation2 + $0x30] sm:$0xff] %vm818_vm4, %v1181_v56 }
 0x40e PF: > { %s2342_s16 = sld [smem:[#allocation16_spill]] }
 0x40f   : > { %s2343_s10 = sld [smem:[#allocation15_spill]] }
 0x414   : > { %p1191_p4 = scmp.eq.s32.totalorder %s2342_s16, 3 }
 0x415   : > { %p1192_p5 = scmp.eq.s32.totalorder %s2343_s10, 1 }
 0x417   : > { %p1193_p6 = pnand %p1192_p5, %p1191_p4 }
 0x419   : > { %1196 = sbr.rel (%p1193_p6) target bundleno = 1059 (0x423), region = 105 }
 0x41e   : > { %v1197_v39 = vld [vmem:[#allocation2] sm:$0xff]  ;;  %vm1205_vm5 = vcmask 523264   ;;  %v1198_v38 = vld [vmem:[#allocation2 + $0x8] sm:$0xff]  ;;  %v1199_v40 = vld [vmem:[#allocation2 + $0x10] sm:$0xff] }
 0x41f   : > { %1206 = vst.msk [vmem:[%s2036_s7] sm:$0xff] %vm1205_vm5, %v1197_v39  ;;  %1207 = vst.msk [vmem:[%s2036_s7 + $0x8] sm:$0xff] %vm1205_vm5, %v1198_v38  ;;  %v1200_v41 = vld [vmem:[#allocation2 + $0x18] sm:$0xff]  ;;  %v1201_v57 = vld [vmem:[#allocation2 + $0x20] sm:$0xff] }
 0x420   : > { %1208 = vst.msk [vmem:[%s2036_s7 + $0x10] sm:$0xff] %vm1205_vm5, %v1199_v40  ;;  %v1202_v58 = vld [vmem:[#allocation2 + $0x28] sm:$0xff]  ;;  %1209 = vst.msk [vmem:[%s2036_s7 + $0x18] sm:$0xff] %vm1205_vm5, %v1200_v41  ;;  %v1203_v59 = vld [vmem:[#allocation2 + $0x30] sm:$0xff] }
 0x421   : > { %1210 = vst.msk [vmem:[%s2036_s7 + $0x20] sm:$0xff] %vm1205_vm5, %v1201_v57  ;;  %1211 = vst.msk [vmem:[%s2036_s7 + $0x28] sm:$0xff] %vm1205_vm5, %v1202_v58  ;;  %v1204_v60 = vld [vmem:[#allocation2 + $0x38] sm:$0xff] }
 0x422   : > { %1212 = vst.msk [vmem:[%s2036_s7 + $0x30] sm:$0xff] %vm1205_vm5, %v1203_v59  ;;  %1213 = vst.msk [vmem:[%s2036_s7 + $0x38] sm:$0xff] %vm1205_vm5, %v1204_v60 }
 0x423 PF: > { %s1443_s29 = sshll.u32 %s1768_s20, 10  ;;  %s2344_s0 = sld [smem:[#allocation31_spill]] }
 0x424   : > { %s1228_s5 = sshll.u32 %s2036_s7, 4  ;;  %s2345_s30 = sand.u32 1, %s1744_s14   ;;  %s2211_s5 = int_to_ptr.vmem [resolvable:$true] %s1228_s5 }
 0x425   : > { %s2215_s21 = scalar_lea.sflag [#allocation9], %s2345_s30  ;;  %s1658_s28 = scalar_lea.vmem %s2211_s5, 1024 }
 0x426   : > { %p1659_p7 = scmp.ne.s32.totalorder %s2211_s5, %s1658_s28  ;;  %s1791_s20 = smov [#allocation8]  }
 0x427   : > { %s1662_s11 = sshll.u32 %s1791_s20, 4  ;;  %s1663_s11 = int_to_ptr.vmem [resolvable:$false] %s1662_s11 }
 0x428   : > { %p1660_p9 = pnand %p1659_p7, %p1949_p8  ;;  %s1664_s1 = scalar_lea.vmem %s1663_s11, 2048 }
 0x429   : > { %s2208_s9 = scalar_lea.hbm %s2344_s0, %s1443_s29  ;;  %p1665_p12 = scmp.lt.s32.totalorder %s2211_s5, %s1663_s11 }
 0x42a   : > { %p1661_p11 = pneg %p1660_p9  ;;  %p1666_p13 = scmp.lt.s32.totalorder %s1664_s1, %s1658_s28 }
 0x42c   : > { %p1667_p0 = por %p1666_p13, %p1665_p12 }
 0x42e   : > { %p1668_p1 = pnand %p1667_p0, %p1661_p11 }
 0x430   : > { %1671 = shalt.err (!%p1668_p1)
}
 0x431   : > { %s1672_s3 = scalar_lea.hbm %s2208_s9, 1024  ;;  %s1676_s19 = scalar_lea.hbm %s2344_s0, 2048 }
 0x432   : > { %p1673_p2 = scmp.ne.s32.totalorder %s2208_s9, %s1672_s3  ;;  %p1677_p5 = scmp.lt.s32.totalorder %s2208_s9, %s2344_s0 }
 0x433   : > { %p1678_p6 = scmp.lt.s32.totalorder %s1676_s19, %s1672_s3 }
 0x434   : > { %p1674_p3 = pnand %p1673_p2, %p1949_p8 }
 0x435   : > { %p1679_p7 = por %p1678_p6, %p1677_p5 }
 0x436   : > { %p1675_p4 = pneg %p1674_p3 }
 0x438   : > { %p1680_p9 = pnand %p1679_p7, %p1675_p4 }
 0x43a   : > { %1683 = shalt.err (!%p1680_p9)
}
 0x43b   : > { %s1792_s27 = smov 128   ;;  %s1793_s12 = smov 8  }
 0x43c   : > { %1504 = dma.vmem_to_hbm [thread:$0]  (%p1949_p8), %s2211_s5, 1024, %s2208_s9, %s2215_s21, %s1792_s27, %s1792_s27, %s1793_s12  }
 0x43d PF: > { %s2346_s4 = sld [smem:[#allocation12_spill]]  ;;  %p1510_p11 = scmp.ge.s32.totalorder %s1784_s24, 2 }
 0x43f   : > { %p1507_p12 = pnand %p1510_p11, %p1955_p10 }
 0x441   : > { %p1508_p13 = pneg %p1507_p12 }
 0x443   : > { %s1243_s15 = sand.u32 1, %s2346_s4  }
 0x444   : > { %s1244_s17 = scalar_lea.sflag [#allocation9], %s1243_s15 }
 0x445   : > { %1735 = dma.done.wait (%p1508_p13), %s1244_s17, 1024  }
 0x446   : > { %1737 = vsyncadd (%p1508_p13), %s1244_s17, 4294966272  ;;  %s31_s24 = sadd.s32 1, %s1784_s24   ;;  %s2347_s6 = sld [smem:[#allocation13_spill]] }
 0x447   : > { %p28_p0 = scmp.ge.s32.totalorder %s31_s24, 18   ;;  %s2348_s15 = sld [smem:[#allocation23_spill]] }
 0x448   : > { %s2349_s16 = sld [smem:[#allocation14_spill]]  ;;  %s2357_s1 = smov %s1744_s14 }
 0x449   : > { %s2350_s17 = sld [smem:[#allocation24_spill]] }
 0x44a   : > { %s2351_s18 = sld [smem:[#allocation17_spill]] }
 0x44b   : > { %s2352_s19 = sld [smem:[#allocation18_spill]]  ;;  %30 = sbr.rel (!%p28_p0) target bundleno = 35 (0x23), region = 160 }
 0x44c   : > { %s2353_s20 = sld [smem:[#allocation19_spill]]  ;;  %s2358_s14 = smov %s2347_s6 }
 0x44d   : > { %s2354_s21 = sld [smem:[#allocation20_spill]] }
 0x44e   : > { %s2355_s22 = sld [smem:[#allocation21_spill]] }
 0x44f   : > { %s2356_s23 = sld [smem:[#allocation22_spill]] }
 0x450   :  { %1249 = vsyncpa [#allocation9], 1 }
 0x451   :  { %1251 = vsyncpa [#allocation9 + $0x1], 1 }

</bundles_post_ra>
